<compile_context>
chip_gen: v6e
topology: v6e:2x2x1
jax: 0.10.0
libtpu: 0.0.40
codegen_flags: <defaults>
</compile_context>

<pallas_src>
import jax
import jax.numpy as jnp
from jax.experimental import pallas as pl
from jax.experimental.pallas import tpu as pltpu


def _mnist_mlp_kernel(x_ref, w1_ref, b1_ref, w2_ref, b2_ref, w3_ref, b3_ref, o_ref):
    # On-chip cast of the streamed f32 x tile to the matmul feed dtype (bf16
    # by default). Doing the cast here (instead of a standalone XLA op in the
    # wrapper) keeps HBM traffic for x to a single f32 read.
    x = x_ref[...].astype(w1_ref.dtype)

    # Layer 1: Linear(784 -> 32) + ReLU  (bf16 operands, f32 MXU accumulation)
    h1 = jnp.dot(x, w1_ref[...], preferred_element_type=jnp.float32)
    h1 = jnp.maximum(h1 + b1_ref[...], 0.0)

    # Layer 2: Linear(32 -> 24) + ReLU
    h2 = jnp.dot(h1.astype(w2_ref.dtype), w2_ref[...],
                 preferred_element_type=jnp.float32)
    h2 = jnp.maximum(h2 + b2_ref[...], 0.0)

    # Layer 3: Linear(24 -> 10)
    logits = jnp.dot(h2.astype(w3_ref.dtype), w3_ref[...],
                     preferred_element_type=jnp.float32) + b3_ref[...]

    # LogSoftmax over dim=1 (numerically stable; XLU reductions + EUP exp/log).
    m = jnp.max(logits, axis=1, keepdims=True)
    shifted = logits - m
    lse = jnp.log(jnp.sum(jnp.exp(shifted), axis=1, keepdims=True))
    o_ref[...] = (shifted - lse).astype(o_ref.dtype)


def mnist_nn_forward(x, params, *, tm=1024, use_bf16=True):
    """x: (B, 784) float32 -> (B, 10) float32 log-probabilities."""
    w1, b1, w2, b2, w3, b3 = params
    B, F = x.shape
    n_out = w3.shape[1]

    # Batch tile selection (no wrapper-side padding of x):
    #   * B <= tm: one tile whose batch dim equals the full array dim (legal
    #     for any B, including non-multiples of 8).
    #   * B  > tm: tm-row tiles (tm % 8 == 0) over a cdiv grid; Pallas masks
    #     the partial edge block, and rows beyond B are never written.
    tm_eff = B if B <= tm else tm
    n_blocks = pl.cdiv(B, tm_eff)

    # bf16 feeds for the MXU weights (tiny, VMEM-resident); biases, MXU
    # accumulation, ReLU and log-softmax stay f32.
    mat_dtype = jnp.bfloat16 if use_bf16 else jnp.float32
    w1c, w2c, w3c = (w.astype(mat_dtype) for w in (w1, w2, w3))

    def resident(shape):
        nd = len(shape)
        return pl.BlockSpec(shape, lambda i, _nd=nd: (0,) * _nd)

    grid_spec = pl.GridSpec(
        grid=(n_blocks,),
        in_specs=[
            pl.BlockSpec((tm_eff, F), lambda i: (i, 0)),   # streamed f32 x tiles
            resident(w1c.shape), resident(b1.shape),        # VMEM-resident params
            resident(w2c.shape), resident(b2.shape),
            resident(w3c.shape), resident(b3.shape),
        ],
        out_specs=pl.BlockSpec((tm_eff, n_out), lambda i: (i, 0)),
    )

    # Advisory cost estimate (x + params + output bytes).
    x_bytes = int(x.size) * jnp.dtype(x.dtype).itemsize
    param_bytes = sum(int(w.size) * jnp.dtype(mat_dtype).itemsize for w in (w1c, w2c, w3c)) \
        + sum(int(b.size) * 4 for b in (b1, b2, b3))
    out_bytes = B * n_out * 4
    flops = 2 * B * (F * w1.shape[1] + w1.shape[1] * w2.shape[1] + w2.shape[1] * n_out)

    # VMEM budget: double-buffered f32 x tile + (lane-padded) output tile +
    # resident params + generous headroom; capped safely below v7x's 64 MiB.
    vmem_bytes = (2 * tm_eff * F * 4
                  + 2 * tm_eff * max(n_out, 128) * 4
                  + 2 * param_bytes
                  + (8 << 20))

    out = pl.pallas_call(
        _mnist_mlp_kernel,
        out_shape=jax.ShapeDtypeStruct((B, n_out), jnp.float32),
        grid_spec=grid_spec,
        compiler_params=pltpu.CompilerParams(
            dimension_semantics=("parallel",),
            vmem_limit_bytes=int(min(vmem_bytes, 48 << 20)),
        ),
        cost_estimate=pl.CostEstimate(
            flops=flops,
            transcendentals=B * (n_out + 1),   # exp per logit + log per row
            bytes_accessed=x_bytes + param_bytes + out_bytes,
        ),
    )(x, w1c, b1, w2c, b2, w3c, b3)

    return out


def init_params(key):
    """Deterministic init mirroring PyTorch Linear shapes (stored transposed: (in, out))."""
    ks = jax.random.split(key, 6)

    def linear(kw, kb, fan_in, fan_out):
        bound = 1.0 / jnp.sqrt(fan_in)
        w = jax.random.uniform(kw, (fan_in, fan_out), jnp.float32, -bound, bound)
        b = jax.random.uniform(kb, (1, fan_out), jnp.float32, -bound, bound)
        return w, b

    w1, b1 = linear(ks[0], ks[1], 28 * 28, 32)
    w2, b2 = linear(ks[2], ks[3], 32, 24)
    w3, b3 = linear(ks[4], ks[5], 24, 10)
    return (w1, b1, w2, b2, w3, b3)


if __name__ == "__main__":
    key = jax.random.PRNGKey(0)
    k_params, k_x = jax.random.split(key)

    params = init_params(k_params)
    B = 10  # deliberately not a multiple of 8 to exercise the full-dim block path
    x = jax.random.normal(k_x, (B, 28 * 28), jnp.float32)

    out = mnist_nn_forward(x, params)
    out = jax.block_until_ready(out)

    # Reference check in plain f32 JAX (bf16 matmul feeds -> loose tolerance).
    w1, b1, w2, b2, w3, b3 = params
    h1 = jnp.maximum(x @ w1 + b1, 0.0)
    h2 = jnp.maximum(h1 @ w2 + b2, 0.0)
    logits = h2 @ w3 + b3
    ref = jax.nn.log_softmax(logits, axis=1)

    assert out.shape == (B, 10)
    assert bool(jnp.all(jnp.isfinite(out)))
    assert jnp.allclose(out, ref, atol=2e-2, rtol=2e-2), float(jnp.max(jnp.abs(out - ref)))

    print("KERNEL_OK")
</pallas_src>

<mosaic_0001>
module attributes {stable_mosaic.version = 11 : i64} {
  func.func @_mnist_mlp_kernel(%arg0: i32, %arg1: memref<10x784xf32, #tpu.memory_space<vmem>>, %arg2: memref<784x32xbf16, #tpu.memory_space<vmem>>, %arg3: memref<1x32xf32, #tpu.memory_space<vmem>>, %arg4: memref<32x24xbf16, #tpu.memory_space<vmem>>, %arg5: memref<1x24xf32, #tpu.memory_space<vmem>>, %arg6: memref<24x10xbf16, #tpu.memory_space<vmem>>, %arg7: memref<1x10xf32, #tpu.memory_space<vmem>>, %arg8: memref<10x10xf32, #tpu.memory_space<vmem>>) attributes {dimension_semantics = [#tpu.dimension_semantics<parallel>], iteration_bounds = array<i64: 1>, scalar_prefetch = 0 : i64, scratch_operands = 0 : i64, tpu.core_type = #tpu.core_type<tc>, window_params = [{transform_indices = @transform_0, window_bounds = array<i64: 10, 784>}, {pipeline_mode = #tpu.pipeline_mode<synchronous>, transform_indices = @transform_1, window_bounds = array<i64: 784, 32>}, {pipeline_mode = #tpu.pipeline_mode<synchronous>, transform_indices = @transform_2, window_bounds = array<i64: 1, 32>}, {pipeline_mode = #tpu.pipeline_mode<synchronous>, transform_indices = @transform_3, window_bounds = array<i64: 32, 24>}, {pipeline_mode = #tpu.pipeline_mode<synchronous>, transform_indices = @transform_4, window_bounds = array<i64: 1, 24>}, {pipeline_mode = #tpu.pipeline_mode<synchronous>, transform_indices = @transform_5, window_bounds = array<i64: 24, 10>}, {pipeline_mode = #tpu.pipeline_mode<synchronous>, transform_indices = @transform_6, window_bounds = array<i64: 1, 10>}, {transform_indices = @transform_7, window_bounds = array<i64: 10, 10>}]} {
    %c0 = arith.constant 0 : index
    %c0_0 = arith.constant 0 : index
    %0 = vector.load %arg1[%c0, %c0_0] : memref<10x784xf32, #tpu.memory_space<vmem>>, vector<10x784xf32>
    %1 = arith.truncf %0 : vector<10x784xf32> to vector<10x784xbf16>
    %c0_1 = arith.constant 0 : index
    %c0_2 = arith.constant 0 : index
    %2 = vector.load %arg2[%c0_1, %c0_2] : memref<784x32xbf16, #tpu.memory_space<vmem>>, vector<784x32xbf16>
    %cst = arith.constant dense<0.000000e+00> : vector<10x32xf32>
    %3 = tpu.matmul %1, %2, %cst {dimension_numbers = #tpu.dot_dimension_numbers<[1], [0], [0], [1], [0, 0, 1, 1], [], []>} : vector<10x784xbf16>, vector<784x32xbf16>, vector<10x32xf32> -> vector<10x32xf32>
    %c0_3 = arith.constant 0 : index
    %c0_4 = arith.constant 0 : index
    %4 = vector.load %arg3[%c0_3, %c0_4] : memref<1x32xf32, #tpu.memory_space<vmem>>, vector<1x32xf32>
    %5 = vector.broadcast %4 : vector<1x32xf32> to vector<10x32xf32>
    %6 = arith.addf %3, %5 : vector<10x32xf32>
    %cst_5 = arith.constant 0.000000e+00 : f32
    %7 = vector.broadcast %cst_5 : f32 to vector<10x32xf32>
    %8 = arith.maximumf %6, %7 : vector<10x32xf32>
    %9 = arith.truncf %8 : vector<10x32xf32> to vector<10x32xbf16>
    %c0_6 = arith.constant 0 : index
    %c0_7 = arith.constant 0 : index
    %10 = vector.load %arg4[%c0_6, %c0_7] : memref<32x24xbf16, #tpu.memory_space<vmem>>, vector<32x24xbf16>
    %cst_8 = arith.constant dense<0.000000e+00> : vector<10x24xf32>
    %11 = tpu.matmul %9, %10, %cst_8 {dimension_numbers = #tpu.dot_dimension_numbers<[1], [0], [0], [1], [0, 0, 1, 1], [], []>} : vector<10x32xbf16>, vector<32x24xbf16>, vector<10x24xf32> -> vector<10x24xf32>
    %c0_9 = arith.constant 0 : index
    %c0_10 = arith.constant 0 : index
    %12 = vector.load %arg5[%c0_9, %c0_10] : memref<1x24xf32, #tpu.memory_space<vmem>>, vector<1x24xf32>
    %13 = vector.broadcast %12 : vector<1x24xf32> to vector<10x24xf32>
    %14 = arith.addf %11, %13 : vector<10x24xf32>
    %cst_11 = arith.constant 0.000000e+00 : f32
    %15 = vector.broadcast %cst_11 : f32 to vector<10x24xf32>
    %16 = arith.maximumf %14, %15 : vector<10x24xf32>
    %17 = arith.truncf %16 : vector<10x24xf32> to vector<10x24xbf16>
    %c0_12 = arith.constant 0 : index
    %c0_13 = arith.constant 0 : index
    %18 = vector.load %arg6[%c0_12, %c0_13] : memref<24x10xbf16, #tpu.memory_space<vmem>>, vector<24x10xbf16>
    %cst_14 = arith.constant dense<0.000000e+00> : vector<10x10xf32>
    %19 = tpu.matmul %17, %18, %cst_14 {dimension_numbers = #tpu.dot_dimension_numbers<[1], [0], [0], [1], [0, 0, 1, 1], [], []>} : vector<10x24xbf16>, vector<24x10xbf16>, vector<10x10xf32> -> vector<10x10xf32>
    %c0_15 = arith.constant 0 : index
    %c0_16 = arith.constant 0 : index
    %20 = vector.load %arg7[%c0_15, %c0_16] : memref<1x10xf32, #tpu.memory_space<vmem>>, vector<1x10xf32>
    %21 = vector.broadcast %20 : vector<1x10xf32> to vector<10x10xf32>
    %22 = arith.addf %19, %21 : vector<10x10xf32>
    %cst_17 = arith.constant dense<0xFF800000> : vector<10xf32>
    %23 = vector.multi_reduction <maximumf>, %22, %cst_17 [1] : vector<10x10xf32> to vector<10xf32>
    %24 = vector.shape_cast %23 : vector<10xf32> to vector<10x1xf32>
    %25 = vector.broadcast %24 : vector<10x1xf32> to vector<10x10xf32>
    %26 = arith.subf %22, %25 : vector<10x10xf32>
    %27 = math.exp %26 : vector<10x10xf32>
    %cst_18 = arith.constant dense<0.000000e+00> : vector<10xf32>
    %28 = vector.multi_reduction <add>, %27, %cst_18 [1] : vector<10x10xf32> to vector<10xf32>
    %29 = vector.shape_cast %28 : vector<10xf32> to vector<10x1xf32>
    %30 = math.log %29 : vector<10x1xf32>
    %31 = vector.broadcast %30 : vector<10x1xf32> to vector<10x10xf32>
    %32 = arith.subf %26, %31 : vector<10x10xf32>
    %c0_19 = arith.constant 0 : index
    %c0_20 = arith.constant 0 : index
    %33 = vector.load %arg8[%c0_19, %c0_20] : memref<10x10xf32, #tpu.memory_space<vmem>>, vector<10x10xf32>
    tpu.vector_store %arg8[%c0_19, %c0_20], %32 {strides = array<i32>} : memref<10x10xf32, #tpu.memory_space<vmem>>, vector<10x10xf32>,
    return
  }
  func.func @transform_0(%arg0: i32) -> (i32, i32) {
    %c0_i32 = arith.constant 0 : i32
    %c0_i32_0 = arith.constant 0 : i32
    return %arg0, %c0_i32 : i32, i32
  }
  func.func @transform_1(%arg0: i32) -> (i32, i32) {
    %c0_i32 = arith.constant 0 : i32
    %c0_i32_0 = arith.constant 0 : i32
    %c0_i32_1 = arith.constant 0 : i32
    return %c0_i32, %c0_i32_0 : i32, i32
  }
  func.func @transform_2(%arg0: i32) -> (i32, i32) {
    %c0_i32 = arith.constant 0 : i32
    %c0_i32_0 = arith.constant 0 : i32
    %c0_i32_1 = arith.constant 0 : i32
    return %c0_i32, %c0_i32_0 : i32, i32
  }
  func.func @transform_3(%arg0: i32) -> (i32, i32) {
    %c0_i32 = arith.constant 0 : i32
    %c0_i32_0 = arith.constant 0 : i32
    %c0_i32_1 = arith.constant 0 : i32
    return %c0_i32, %c0_i32_0 : i32, i32
  }
  func.func @transform_4(%arg0: i32) -> (i32, i32) {
    %c0_i32 = arith.constant 0 : i32
    %c0_i32_0 = arith.constant 0 : i32
    %c0_i32_1 = arith.constant 0 : i32
    return %c0_i32, %c0_i32_0 : i32, i32
  }
  func.func @transform_5(%arg0: i32) -> (i32, i32) {
    %c0_i32 = arith.constant 0 : i32
    %c0_i32_0 = arith.constant 0 : i32
    %c0_i32_1 = arith.constant 0 : i32
    return %c0_i32, %c0_i32_0 : i32, i32
  }
  func.func @transform_6(%arg0: i32) -> (i32, i32) {
    %c0_i32 = arith.constant 0 : i32
    %c0_i32_0 = arith.constant 0 : i32
    %c0_i32_1 = arith.constant 0 : i32
    return %c0_i32, %c0_i32_0 : i32, i32
  }
  func.func @transform_7(%arg0: i32) -> (i32, i32) {
    %c0_i32 = arith.constant 0 : i32
    %c0_i32_0 = arith.constant 0 : i32
    return %arg0, %c0_i32 : i32, i32
  }
}

</mosaic_0001>

<bundles_post_ra>
// kernel: tpu_custom_call.1
= control target key start
LH: loop header
LB: loop body
LE: loop exit
PB: predicated region body
PF: predicated region fallthrough
CT: control target
= control target key end

     0   :  { %v1045_v43 = vmov 0.0   ;;  %vm1046_vm0 = vmmov 0   ;;  %vm448_vm1 = vcmask 130048   ;;  %s1320_s0 = inlined_call_operand.vmem [shape: f32[10,784], index: 0, kind: input, shape index: {}]   ;;  %s1321_s1 = inlined_call_operand.vmem [shape: bf16[784,32], index: 1, kind: input, shape index: {}]   ;;  %s1322_s2 = inlined_call_operand.vmem [shape: f32[1,32], index: 2, kind: input, shape index: {}]   ;;  %s1323_s3 = inlined_call_operand.vmem [shape: bf16[32,24], index: 3, kind: input, shape index: {}]   ;;  %s1324_s4 = inlined_call_operand.vmem [shape: f32[1,24], index: 4, kind: input, shape index: {}]   ;;  %s1325_s5 = inlined_call_operand.vmem [shape: bf16[24,10], index: 5, kind: input, shape index: {}]   ;;  %s1326_s6 = inlined_call_operand.vmem [shape: f32[1,10], index: 6, kind: input, shape index: {}]   ;;  %s1327_s7 = inlined_call_operand.hbm [shape: f32[10,10], index: 7, kind: output, shape index: {}]  }
   0x1   :  { %v962_v0 = vld [vmem:[%s1321_s1 + $0x78] sm:$0xff]   ;;  %v966_v4 = vld [vmem:[%s1321_s1 + $0x70] sm:$0xff]   ;;  %v970_v8 = vld [vmem:[%s1321_s1 + $0x68] sm:$0xff]  }
   0x2   :  { %v963_v1 = vld [vmem:[%s1321_s1 + $0x38] sm:$0xff]   ;;  %861 = vmatprep.subr.bf16.mxu0 %v962_v0  ;;  %v967_v5 = vld [vmem:[%s1321_s1 + $0x30] sm:$0xff]   ;;  %v971_v9 = vld [vmem:[%s1321_s1 + $0x28] sm:$0xff]  }
   0x3   :  { %v964_v2 = vld [vmem:[%s1321_s1 + $0xf8] sm:$0xff]   ;;  %862 = vmatpush3.bf16.msra.mxu0 %v963_v1  ;;  %v968_v6 = vld [vmem:[%s1321_s1 + $0xf0] sm:$0xff]   ;;  %v972_v10 = vld [vmem:[%s1321_s1 + $0xe8] sm:$0xff]  }
   0x4   :  { %v965_v3 = vld [vmem:[%s1321_s1 + $0xb8] sm:$0xff]   ;;  %883 = vmatprep.subr.bf16.mxu1 %v964_v2  ;;  %863 = vmatprep.subr.bf16.mxu0 %v966_v4  ;;  %v969_v7 = vld [vmem:[%s1321_s1 + $0xb0] sm:$0xff]   ;;  %v973_v11 = vld [vmem:[%s1321_s1 + $0xa8] sm:$0xff]  }
   0x5   :  { %884 = vmatpush3.bf16.msra.mxu1 %v965_v3  ;;  %v974_v12 = vld [vmem:[%s1321_s1 + $0x60] sm:$0xff]   ;;  %v978_v16 = vld [vmem:[%s1321_s1 + $0x58] sm:$0xff]   ;;  %v982_v20 = vld [vmem:[%s1321_s1 + $0x50] sm:$0xff]  }
   0x6   :  { %885 = vmatprep.subr.bf16.mxu1 %v968_v6  ;;  %v975_v13 = vld [vmem:[%s1321_s1 + $0x20] sm:$0xff]   ;;  %v979_v17 = vld [vmem:[%s1321_s1 + $0x18] sm:$0xff]   ;;  %v983_v21 = vld [vmem:[%s1321_s1 + $0x10] sm:$0xff]  }
   0x7   :  { %864 = vmatpush3.bf16.msra.mxu0 %v967_v5  ;;  %v976_v14 = vld [vmem:[%s1321_s1 + $0xe0] sm:$0xff]   ;;  %v980_v18 = vld [vmem:[%s1321_s1 + $0xd8] sm:$0xff]   ;;  %v984_v22 = vld [vmem:[%s1321_s1 + $0xd0] sm:$0xff]  }
   0x8   :  { %865 = vmatprep.subr.bf16.mxu0 %v970_v8  ;;  %v977_v15 = vld [vmem:[%s1321_s1 + $0xa0] sm:$0xff]   ;;  %v981_v19 = vld [vmem:[%s1321_s1 + $0x98] sm:$0xff]   ;;  %v985_v23 = vld [vmem:[%s1321_s1 + $0x90] sm:$0xff]  }
   0x9   :  { %886 = vmatpush3.bf16.msra.mxu1 %v969_v7  ;;  %v986_v24 = vld [vmem:[%s1321_s1 + $0x48] sm:$0xff]   ;;  %v990_v28 = vld [vmem:[%s1321_s1 + $0x40] sm:$0xff]   ;;  %v35_v36 = vld [vmem:[%s1320_s0 + $0x38] sm:$0x3] }
   0xa   :  { %887 = vmatprep.subr.bf16.mxu1 %v972_v10  ;;  %v987_v25 = vld [vmem:[%s1321_s1 + $0x8] sm:$0xff]   ;;  %v991_v29 = vld [vmem:[%s1321_s1] sm:$0xff]   ;;  %v994_v38 = vld [vmem:[%s1321_s1 + $0x178] sm:$0xff]  }
   0xb   :  { %866 = vmatpush3.bf16.msra.mxu0 %v971_v9  ;;  %v988_v26 = vld [vmem:[%s1321_s1 + $0xc8] sm:$0xff]   ;;  %v992_v30 = vld [vmem:[%s1321_s1 + $0xc0] sm:$0xff]   ;;  %v31_v39 = vld [vmem:[%s1320_s0 + $0x18] sm:$0xff] }
   0xc   :  { %867 = vmatprep.subr.bf16.mxu0 %v974_v12  ;;  %v989_v27 = vld [vmem:[%s1321_s1 + $0x88] sm:$0xff]   ;;  %v36_v32 = vld [vmem:[%s1320_s0 + $0x40] sm:$0x3]  ;;  %v38_v40 = vld [vmem:[%s1320_s0 + $0x50] sm:$0x3] }
   0xd   :  { %888 = vmatpush3.bf16.msra.mxu1 %v973_v11  ;;  %v29_v31 = vld [vmem:[%s1320_s0 + $0x8] sm:$0xff]  ;;  %v993_v34 = vld [vmem:[%s1321_s1 + $0x80] sm:$0xff]   ;;  %v45_v41 = vpack.c.bf16 %v38_v40, %v31_v39  ;;  %v995_v42 = vld [vmem:[%s1321_s1 + $0x138] sm:$0xff]  }
   0xe   :  { %889 = vmatprep.subr.bf16.mxu1 %v976_v14  ;;  %v43_v33 = vpack.c.bf16 %v36_v32, %v29_v31  ;;  %v28_v35 = vld [vmem:[%s1320_s0] sm:$0xff]  ;;  %v30_v44 = vld [vmem:[%s1320_s0 + $0x10] sm:$0xff]  ;;  %v37_v45 = vld [vmem:[%s1320_s0 + $0x48] sm:$0x3] }
   0xf   :  { %868 = vmatpush3.bf16.msra.mxu0 %v975_v13  ;;  %v42_v37 = vpack.c.bf16 %v35_v36, %v28_v35  ;;  %525 = vmatprep.mubr.bf16.mxu1 %v45_v41  ;;  %v44_v46 = vpack.c.bf16 %v37_v45, %v30_v44  ;;  %v996_v47 = vld [vmem:[%s1321_s1 + $0x170] sm:$0xff]   ;;  %v998_v49 = vld [vmem:[%s1321_s1 + $0x168] sm:$0xff]   ;;  %v1000_v51 = vld [vmem:[%s1321_s1 + $0x160] sm:$0xff]  }
  0x10   :  { %869 = vmatprep.subr.bf16.mxu0 %v978_v16  ;;  %484 = vmatprep.mubr.bf16.mxu0 %v43_v33  ;;  %v997_v48 = vld [vmem:[%s1321_s1 + $0x130] sm:$0xff]   ;;  %v999_v50 = vld [vmem:[%s1321_s1 + $0x128] sm:$0xff]   ;;  %v1001_v52 = vld [vmem:[%s1321_s1 + $0x120] sm:$0xff]  }
  0x11   :  { %890 = vmatpush3.bf16.msra.mxu1 %v977_v15  ;;  %v1002_v53 = vld [vmem:[%s1321_s1 + $0x158] sm:$0xff]   ;;  %v1004_v55 = vld [vmem:[%s1321_s1 + $0x150] sm:$0xff]   ;;  %v1010_v56 = vld [vmem:[%s1321_s1 + $0x180] sm:$0xff]  }
  0x12   :  { %891 = vmatprep.subr.bf16.mxu1 %v980_v18  ;;  %v1003_v54 = vld [vmem:[%s1321_s1 + $0x118] sm:$0xff]   ;;  %v33_v57 = vld [vmem:[%s1320_s0 + $0x28] sm:$0xff]  ;;  %v1005_v58 = vld [vmem:[%s1321_s1 + $0x110] sm:$0xff]  }
  0x13   :  { %870 = vmatpush3.bf16.msra.mxu0 %v979_v17  ;;  %v1006_v59 = vld [vmem:[%s1321_s1 + $0x148] sm:$0xff]   ;;  %v40_v60 = vld [vmem:[%s1320_s0 + $0x60] sm:$0x3]  ;;  %v34_v62 = vld [vmem:[%s1320_s0 + $0x30] sm:$0xff] }
  0x14   :  { %871 = vmatprep.subr.bf16.mxu0 %v982_v20  ;;  %v47_v61 = vpack.c.bf16 %v40_v60, %v33_v57  ;;  %v41_v63 = vld [vmem:[%s1320_s0 + $0x68] sm:$0x3] }
  0x15   :  { %892 = vmatpush3.bf16.msra.mxu1 %v981_v19  ;;  %v48_v0 = vpack.c.bf16 %v41_v63, %v34_v62 }
  0x16   :  { %893 = vmatprep.subr.bf16.mxu1 %v984_v22 }
  0x17   :  { %872 = vmatpush3.bf16.msra.mxu0 %v983_v21 }
  0x18   :  { %873 = vmatprep.subr.bf16.mxu0 %v986_v24 }
  0x19   :  { %894 = vmatpush3.bf16.msra.mxu1 %v985_v23 }
  0x1a   :  { %895 = vmatprep.subr.bf16.mxu1 %v988_v26 }
  0x1b   :  { %874 = vmatpush3.bf16.msra.mxu0 %v987_v25 }
  0x1c   :  { %875 = vmatprep.subr.bf16.mxu0 %v990_v28 }
  0x1d   :  { %896 = vmatpush3.bf16.msra.mxu1 %v989_v27 }
  0x1e   :  { %897 = vmatprep.subr.bf16.mxu1 %v992_v30 }
  0x1f   :  { %876 = vmatpush3.bf16.msra.mxu0 %v991_v29 }
  0x20   :  { %905 = vmatprep.subr.bf16.mxu0 %v994_v38 }
  0x21   :  { %898 = vmatpush3.bf16.msra.mxu1 %v993_v34 }
  0x22   :  { %935 = vmatprep.subr.bf16.mxu1 %v1045_v43  ;;  %485 = vmatmul.mubr.bf16.vlgmr.msra.gmra.mxu0 %v42_v37 }
  0x23   :  { %906 = vmatpush3.bf16.msra.mxu0 %v995_v42  ;;  %566 = vmatprep.mubr.bf16.mxu0 %v47_v61 }
  0x24   :  { %526 = vmatmul.mubr.bf16.vlgmr.msra.gmra.mxu1 %v44_v46  ;;  %907 = vmatprep.subr.bf16.mxu0 %v996_v47 }
  0x25   :  { %937 = vmatprep.mubr.msk.bf16.mxu1 %vm1046_vm0, %v1045_v43  ;;  %936 = vmatpush3.bf16.msra.mxu1 %v1010_v56 }
  0x26   :  { %941 = vmatprep.subr.bf16.mxu1 %v1045_v43 }
  0x27   :  { %908 = vmatpush3.bf16.msra.mxu0 %v997_v48 }
  0x28   :  { %909 = vmatprep.subr.bf16.mxu0 %v998_v49 }
  0x2b   :  { %910 = vmatpush3.bf16.msra.mxu0 %v999_v50 }
  0x2c   :  { %911 = vmatprep.subr.bf16.mxu0 %v1000_v51  ;;  %938 = vmatmul.mubr.msk.bf16.vlgmr.msra.gmra.mxu1 %vm448_vm1, %v48_v0 }
  0x2f   :  { %912 = vmatpush3.bf16.msra.mxu0 %v1001_v52 }
  0x30   :  { %913 = vmatprep.subr.bf16.mxu0 %v1002_v53 }
  0x33   :  { %914 = vmatpush3.bf16.msra.mxu0 %v1003_v54 }
  0x34   :  { %915 = vmatprep.subr.bf16.mxu0 %v1004_v55 }
  0x35   :  { %12 = vsyncpa [#allocation3], 0  ;;  %v1007_v1 = vld [vmem:[%s1321_s1 + $0x108] sm:$0xff]   ;;  %945 = vmatprep.mubr.msk.bf16.mxu1 %vm1046_vm0, %v1045_v43  ;;  %v1008_v2 = vld [vmem:[%s1321_s1 + $0x140] sm:$0xff]   ;;  %vm642_vm2 = vcmask 261120   ;;  %vm713_vm3 = vcmask 1043456  }
  0x36   :  { %v1009_v3 = vld [vmem:[%s1321_s1 + $0x100] sm:$0xff]   ;;  %v39_v5 = vld [vmem:[%s1320_s0 + $0x58] sm:$0x3]  ;;  %v1011_v7 = vld [vmem:[%s1323_s3 + $0x8] sm:$0xff]   ;;  %vm709_vm4 = vcmask 195584   ;;  %vm758_vm5 = vcmask 80896  }
  0x37   :  { %916 = vmatpush3.bf16.msra.mxu0 %v1005_v58  ;;  %v32_v4 = vld [vmem:[%s1320_s0 + $0x20] sm:$0xff]  ;;  %942 = vmatpush3.bf16.msra.mxu1 %v1011_v7  ;;  %v1013_v44 = vld [vmem:[%s1325_s5 + $0x8] ss:$0 sps:$4 sm:$0xff]   ;;  %vm762_vm6 = vcmask 74752  }
  0x38   :  { %917 = vmatprep.subr.bf16.mxu0 %v1006_v59  ;;  %v46_v6 = vpack.c.bf16 %v39_v5, %v32_v4  ;;  %943 = vmatprep.subr.bf16.mxu1 %v1045_v43  ;;  %v1012_v8 = vld [vmem:[%s1323_s3] sm:$0xff]   ;;  %v715_v45 = vsel %vm713_vm3, %v1013_v44, 0 }
  0x39   :  { %v802_v21 = vld [vmem:[%s1322_s2] ss:$0 sm:$0xff] }
  0x3a   :  { %v1014_v46 = vld [vmem:[%s1325_s5] sm:$0xff]  }
  0x3b   :  { %918 = vmatpush3.bf16.msra.mxu0 %v1007_v1  ;;  %944 = vmatpush3.bf16.msra.mxu1 %v1012_v8  ;;  %v853_v47 = vld [vmem:[%s1324_s4] ss:$0 sm:$0xff]  ;;  %s1047_s4 = smov [#allocation2]  }
  0x3c   :  { %919 = vmatprep.subr.bf16.mxu0 %v1008_v2  ;;  %949 = vmatprep.subr.bf16.mxu1 %v1045_v43  ;;  %s791_s5 = sshll.u32 %s1047_s4, 4  ;;  %s792_s5 = int_to_ptr.vmem [resolvable:$true] %s791_s5 }
  0x3d   :  { %p1028_p1 = scmp.lt.s32.totalorder %s792_s5, %s792_s5 }
  0x3f   :  { %920 = vmatpush3.bf16.msra.mxu0 %v1009_v3 }
  0x42   :  { %567 = vmatmul.mubr.bf16.vlgmr.msra.gmra.mxu0 %v46_v6 }
  0xe2   :  { %v877_v12 = vpop.f32.mrf.mxu0 }
  0xe4   :  { %v899_v9 = vpop.f32.mrf.mxu1  ;;  %v878_v14 = vpop.f32.mrf.mxu0 }
  0xe5   :  { %v879_v20 = vadd.f32 %v878_v14, %v877_v12 }
  0xe6   :  { %v900_v10 = vpop.f32.mrf.mxu1  ;;  %v880_v17 = vpop.f32.mrf.mxu0 }
  0xe7   :  { %v487_v23 = vadd.f32 %v879_v20, %v802_v21  ;;  %v901_v24 = vadd.f32 %v900_v10, %v899_v9 }
  0xe8   :  { %v902_v11 = vpop.f32.mrf.mxu1  ;;  %v881_v22 = vpop.f32.mrf.mxu0 }
  0xe9   :  { %v882_v25 = vadd.f32 %v881_v22, %v880_v17  ;;  %v528_v28 = vadd.f32 %v901_v24, %v487_v23 }
  0xea   :  { %v903_v13 = vpop.f32.mrf.mxu1 }
  0xeb   :  { %v490_v29 = vadd.f32 %v882_v25, %v802_v21  ;;  %v904_v30 = vadd.f32 %v903_v13, %v902_v11 }
  0xec   :  { %v609_v15 = vpop.f32.mrf.mxu1 }
  0xed   :  { %v531_v35 = vadd.f32 %v904_v30, %v490_v29 }
  0xee   :  { %v939_v16 = vpop.f32.mrf.mxu1 }
  0xf0   :  { %v612_v18 = vpop.f32.mrf.mxu1 }
  0xf2   :  { %v940_v19 = vpop.f32.mrf.mxu1 }
 0x102   :  { %v921_v26 = vpop.f32.mrf.mxu0 }
 0x104   :  { %v922_v27 = vpop.f32.mrf.mxu0 }
 0x105   :  { %v923_v31 = vadd.f32 %v922_v27, %v921_v26 }
 0x106   :  { %v924_v32 = vpop.f32.mrf.mxu0 }
 0x107   :  { %v569_v33 = vadd.f32 %v923_v31, %v528_v28 }
 0x108   :  { %v925_v34 = vpop.f32.mrf.mxu0 }
 0x109   :  { %v926_v36 = vadd.f32 %v925_v34, %v924_v32  ;;  %v610_v37 = vadd.f32 %v609_v15, %v569_v33 }
 0x10b   :  { %v572_v38 = vadd.f32 %v926_v36, %v531_v35  ;;  %v616_v40 = vmax.f32 %v610_v37, 0.0 }
 0x10d   :  { %v613_v39 = vadd.f32 %v612_v18, %v572_v38 }
 0x10f   :  { %v617_v41 = vmax.f32 %v613_v39, 0.0 }
 0x111   :  { %v618_v42 = vpack.c.bf16 %v617_v41, %v616_v40 }
 0x113   :  { %946 = vmatmul.mubr.msk.bf16.vlgmr.msra.gmra.mxu1 %vm642_vm2, %v618_v42 }
 0x114   :  { %953 = vmatprep.mubr.msk.bf16.mxu1 %vm1046_vm0, %v1045_v43  ;;  %950 = vmatpush3.bf16.msra.mxu1 %v715_v45 }
 0x115   :  { %951 = vmatprep.subr.bf16.mxu1 %v1045_v43  ;;  %v857_v43 = vld [vmem:[%s1326_s6] ss:$0 sm:$0xff]  ;;  %s1023_s6 = scalar_lea.vmem %s792_s5, 256 }
 0x116   :  { %p1024_p0 = scmp.ne.s32.totalorder %s792_s5, %s1023_s6  ;;  %p1029_p2 = scmp.lt.s32.totalorder %s1023_s6, %s1023_s6 }
 0x118   :  { %952 = vmatpush3.bf16.msra.mxu1 %v1014_v46  ;;  %p1030_p3 = por %p1029_p2, %p1028_p1 }
 0x11a   :  { %p1031_p4 = pnand %p1030_p3, %p1024_p0 }
 0x1d3   :  { %v680_v48 = vpop.f32.mrf.mxu1 }
 0x1d4   :  { %v681_v50 = vadd.f32 %v853_v47, %v680_v48 }
 0x1d5   :  { %v947_v49 = vpop.f32.mrf.mxu1 }
 0x1d6   :  { %v687_v54 = vmax.f32 %v681_v50, 0.0 }
 0x1d7   :  { %v683_v51 = vpop.f32.mrf.mxu1 }
 0x1d8   :  { %v684_v52 = vadd.f32 %v853_v47, %v683_v51 }
 0x1d9   :  { %v948_v53 = vpop.f32.mrf.mxu1 }
 0x1da   :  { %v688_v55 = vmax.f32 %v684_v52, 0.0 }
 0x1dc   :  { %v689_v56 = vpack.c.bf16 %v688_v55, %v687_v54 }
 0x1de   :  { %954 = vmatmul.mubr.msk.bf16.vlgmr.msra.gmra.mxu1 %vm709_vm4, %v689_v56 }
 0x29e   :  { %v751_v57 = vpop.f32.mrf.mxu1 }
 0x29f   :  { %v752_v58 = vadd.f32 %v857_v43, %v751_v57 }
 0x2a0   :  { %v955_v59 = vpop.f32.mrf.mxu1 }
 0x2a1   :  { %v759_v60 = vsel %vm758_vm5, %v752_v58, -inf }
 0x2a2   :  { %760 = vmax.xlane.f32.xlu0 %v759_v60  ;;  %v754_v61 = vpop.f32.mrf.mxu1 }
 0x2a3   :  { %v755_v62 = vadd.f32 %v857_v43, %v754_v61 }
 0x2a4   :  { %v956_v63 = vpop.f32.mrf.mxu1 }
 0x2a5   :  { %v763_v0 = vsel %vm762_vm6, %v755_v62, -inf }
 0x2a6   :  { %764 = vmax.xlane.f32.xlu0 %v763_v0 }
 0x32b   :  { %v761_v1 = vpop.xlane.xlu0 %760 }
 0x32c   :  { %v766_v2 = vsub.f32 %v752_v58, %v761_v1 }
 0x32e   :  { %v768_v3 = vmul.f32 1.442695, %v766_v2 }
 0x32f   :  { %v765_v4 = vpop.xlane.xlu0 %764 }
 0x330   :  { %1015 = vpow2.f32 %v768_v3  ;;  %v767_v5 = vsub.f32 %v755_v62, %v765_v4 }
 0x332   :  { %v770_v6 = vmul.f32 1.442695, %v767_v5 }
 0x334   :  { %1017 = vpow2.f32 %v770_v6 }
 0x33d   :  { %v1016_v7 = vpop.eup %1015 }
 0x33e   :  { %v772_v8 = vsel %vm758_vm5, %v1016_v7, 0.0 }
 0x33f   :  { %773 = vadd.xlane.f32.xlu1 %v772_v8 }
 0x341   :  { %v1018_v9 = vpop.eup %1017 }
 0x342   :  { %v775_v10 = vsel %vm762_vm6, %v1018_v9, 0.0 }
 0x343   :  { %776 = vadd.xlane.f32.xlu1 %v775_v10 }
 0x3c8   :  { %v774_v11 = vpop.xlane.xlu1 %773 }
 0x3c9   :  { %1019 = vlog2.f32 %v774_v11 }
 0x3cc   :  { %v777_v12 = vpop.xlane.xlu1 %776 }
 0x3cd   :  { %1021 = vlog2.f32 %v777_v12 }
 0x3d6   :  { %v1020_v13 = vpop.eup %1019 }
 0x3d7   :  { %v779_v14 = vmul.f32 0.6931472, %v1020_v13 }
 0x3d9   :  { %v782_v15 = vsub.f32 %v766_v2, %v779_v14 }
 0x3da   :  { %v1022_v16 = vpop.eup %1021 }
 0x3db   :  { %784 = vst.msk [vmem:[#allocation2] sm:$0xff] %vm758_vm5, %v782_v15  ;;  %v781_v17 = vmul.f32 0.6931472, %v1022_v16 }
 0x3dd   :  { %v783_v18 = vsub.f32 %v767_v5, %v781_v17 }
 0x3df   :  { %785 = vst.msk [vmem:[#allocation2 + $0x8] sm:$0x3] %vm762_vm6, %v783_v18 }
 0x3e0   :  { %1034 = shalt.err (!%p1031_p4)
}
 0x3e1   :  { %s1048_s22 = smov 128   ;;  %s1049_s23 = smov 8  }
 0x3e2   :  { %797 = dma.vmem_to_hbm [thread:$0]  %s792_s5, 256, %s1327_s7, [#allocation3], %s1048_s22, %s1048_s22, %s1049_s23  }
 0x3e3   :  { %1043 = dma.done.wait [#allocation3], 256  }
 0x3e4   :  { %1044 = vsyncadd [#allocation3], 4294967040 }
 0x3e5   :  { %801 = vsyncpa [#allocation3], 1 }

</bundles_post_ra>
